<compile_context>
chip_gen: v7x
topology: tpu7x:2x2x1
jax: 0.10.0
libtpu: 0.0.40
codegen_flags: <defaults>
</compile_context>

<pallas_src>
import jax
import jax.numpy as jnp
from jax.experimental import pallas as pl
from jax.experimental.pallas import tpu as pltpu

LAYER_DIMS = [3072, 1024, 512, 256, 128, 64, 32, 10]
IN_DIM = LAYER_DIMS[0]
OUT_DIM = LAYER_DIMS[-1]
OUT_PAD = 128  # lane-dense final output (10 -> 128); sliced back in the wrapper


# ---------------------------------------------------------------------------
# Kernel: one fused affine map per batch tile.
# ---------------------------------------------------------------------------
def mlp_collapsed_kernel(x_ref, w_ref, b_ref, out_ref):
    # x_ref : bf16 [TM, 3072]      (streamed per grid step)
    # w_ref : bf16 [3072, OUT_PAD] (grid-invariant, VMEM-resident)
    # b_ref : f32  [1,  OUT_PAD]   (grid-invariant)
    # out   : f32  [TM, OUT_PAD]
    out_ref[...] = (
        jnp.dot(x_ref[...], w_ref[...], preferred_element_type=jnp.float32)
        + b_ref[...]
    )


# ---------------------------------------------------------------------------
# Host-side parameter collapse (fp32, full precision).
# In real use this is done once at load time, not per call.
# ---------------------------------------------------------------------------
def collapse_params(params):
    """params: list of (W[in, out] fp32, b[1, out] fp32) -> (W_total, b_total)."""
    hp = jax.lax.Precision.HIGHEST
    w_tot, b_tot = None, None
    for w, b in params:
        w = jnp.asarray(w, jnp.float32)
        b = jnp.asarray(b, jnp.float32).reshape(1, -1)
        if w_tot is None:
            w_tot, b_tot = w, b
        else:
            w_tot = jnp.dot(w_tot, w, precision=hp)
            b_tot = jnp.dot(b_tot, w, precision=hp) + b
    # Zero-pad 10 -> 128 output lanes for lane-dense stores.
    pad = OUT_PAD - w_tot.shape[1]
    if pad > 0:
        w_tot = jnp.pad(w_tot, ((0, 0), (0, pad)))
        b_tot = jnp.pad(b_tot, ((0, 0), (0, pad)))
    return w_tot.astype(jnp.bfloat16), b_tot  # bf16 weight, fp32 bias


def _round_up(n, m):
    return ((n + m - 1) // m) * m


def _choose_tile(batch):
    if batch <= 1024:
        # Single grid step; multiple of 16 rows for clean bf16 sublane packing.
        return _round_up(max(batch, 16), 16)
    # Large batch: 1024-row tiles (~14 MiB VMEM incl. double-buffered x tile)
    # amortize per-grid-step overhead on every TPU generation.
    return 1024


# ---------------------------------------------------------------------------
# Wrapper.
# ---------------------------------------------------------------------------
def mlp_non_act(x, params):
    """x: [B, 3, 32, 32] (anything flattening to [B, 3072]);
    params: list of (W[in, out], b[1, out]) — W transposed vs. PyTorch storage."""
    B = x.shape[0]
    x2d = jnp.asarray(x, jnp.float32).reshape(B, IN_DIM)

    w_tot, b_tot = collapse_params(params)

    TM = _choose_tile(B)
    B_pad = _round_up(B, TM)
    if B_pad != B:
        x2d = jnp.pad(x2d, ((0, B_pad - B), (0, 0)))
    x_bf16 = x2d.astype(jnp.bfloat16)

    grid = (B_pad // TM,)
    # Only split across TensorCores when there is real batch parallelism;
    # otherwise a single-step "parallel" grid just duplicates the weight DMA.
    semantics = ("parallel",) if grid[0] >= 2 else ("arbitrary",)

    flops = 2 * B_pad * IN_DIM * OUT_PAD
    bytes_accessed = (
        x_bf16.size * x_bf16.dtype.itemsize
        + w_tot.size * w_tot.dtype.itemsize
        + b_tot.size * b_tot.dtype.itemsize
        + B_pad * OUT_PAD * 4
    )

    out = pl.pallas_call(
        mlp_collapsed_kernel,
        out_shape=jax.ShapeDtypeStruct((B_pad, OUT_PAD), jnp.float32),
        grid=grid,
        in_specs=[
            # x tile streams along the batch axis.
            pl.BlockSpec((TM, IN_DIM), lambda i: (i, 0),
                         memory_space=pltpu.MemorySpace.VMEM),
            # Collapsed weight/bias: grid-invariant, loaded once, VMEM-resident.
            pl.BlockSpec((IN_DIM, OUT_PAD), lambda i: (0, 0),
                         memory_space=pltpu.MemorySpace.VMEM),
            pl.BlockSpec((1, OUT_PAD), lambda i: (0, 0),
                         memory_space=pltpu.MemorySpace.VMEM),
        ],
        out_specs=pl.BlockSpec((TM, OUT_PAD), lambda i: (i, 0),
                               memory_space=pltpu.MemorySpace.VMEM),
        compiler_params=pltpu.CompilerParams(
            dimension_semantics=semantics,
            # Worst case (TM=1024): 2x 6 MiB x-tiles + 2x 0.5 MiB out-tiles
            # + ~1.5 MiB weight buffers  ->  32 MiB is generous on v5e/v6e/v7x.
            vmem_limit_bytes=32 << 20,
        ),
        cost_estimate=pl.CostEstimate(flops=flops, transcendentals=0,
                                      bytes_accessed=bytes_accessed),
    )(x_bf16, w_tot, b_tot)

    return out[:B, :OUT_DIM]


# ---------------------------------------------------------------------------
# Init + fp32 reference (matches the PyTorch forward semantics).
# ---------------------------------------------------------------------------
def init_params(key):
    """Deterministic init mimicking nn.Linear default: U(-1/sqrt(fan_in), ...)."""
    params = []
    for fan_in, fan_out in zip(LAYER_DIMS[:-1], LAYER_DIMS[1:]):
        key, kw, kb = jax.random.split(key, 3)
        bound = 1.0 / jnp.sqrt(jnp.float32(fan_in))
        # stored as [in, out] (transposed vs PyTorch's [out, in])
        w = jax.random.uniform(kw, (fan_in, fan_out), jnp.float32, -bound, bound)
        b = jax.random.uniform(kb, (1, fan_out), jnp.float32, -bound, bound)
        params.append((w, b))
    return params


def reference(x, params):
    """Pure-JAX fp32 per-layer reference (same math as PyTorch MLP_non_act)."""
    hp = jax.lax.Precision.HIGHEST
    h = jnp.asarray(x, jnp.float32).reshape(x.shape[0], IN_DIM)
    for w, b in params:
        h = jnp.dot(h, jnp.asarray(w, jnp.float32), precision=hp) \
            + jnp.asarray(b, jnp.float32).reshape(1, -1)
    return h


if __name__ == "__main__":
    key = jax.random.PRNGKey(0)
    key, kx = jax.random.split(key)
    # CIFAR-10 style input, small batch.
    x = jax.random.normal(kx, (2, 3, 32, 32), jnp.float32)

    params = init_params(key)

    out = jax.block_until_ready(mlp_non_act(x, params))
    ref = reference(x, params)

    assert out.shape == (2, 10), out.shape
    max_err = jnp.max(jnp.abs(out - ref))
    assert jnp.allclose(out, ref, atol=2e-3, rtol=2e-2), f"max abs err {max_err}"

    print("KERNEL_OK")
</pallas_src>

<mosaic_0001>
module attributes {stable_mosaic.version = 11 : i64} {
  func.func @mlp_collapsed_kernel(%arg0: i32, %arg1: memref<16x3072xbf16, #tpu.memory_space<vmem>>, %arg2: memref<3072x128xbf16, #tpu.memory_space<vmem>>, %arg3: memref<1x128xf32, #tpu.memory_space<vmem>>, %arg4: memref<16x128xf32, #tpu.memory_space<vmem>>) attributes {dimension_semantics = [#tpu.dimension_semantics<arbitrary>], iteration_bounds = array<i64: 1>, scalar_prefetch = 0 : i64, scratch_operands = 0 : i64, tpu.core_type = #tpu.core_type<tc>, window_params = [{transform_indices = @transform_0, window_bounds = array<i64: 16, 3072>}, {pipeline_mode = #tpu.pipeline_mode<synchronous>, transform_indices = @transform_1, window_bounds = array<i64: 3072, 128>}, {pipeline_mode = #tpu.pipeline_mode<synchronous>, transform_indices = @transform_2, window_bounds = array<i64: 1, 128>}, {transform_indices = @transform_3, window_bounds = array<i64: 16, 128>}]} {
    %c0 = arith.constant 0 : index
    %c0_0 = arith.constant 0 : index
    %0 = vector.load %arg1[%c0, %c0_0] : memref<16x3072xbf16, #tpu.memory_space<vmem>>, vector<16x3072xbf16>
    %c0_1 = arith.constant 0 : index
    %c0_2 = arith.constant 0 : index
    %1 = vector.load %arg2[%c0_1, %c0_2] : memref<3072x128xbf16, #tpu.memory_space<vmem>>, vector<3072x128xbf16>
    %cst = arith.constant dense<0.000000e+00> : vector<16x128xf32>
    %2 = tpu.matmul %0, %1, %cst {dimension_numbers = #tpu.dot_dimension_numbers<[1], [0], [0], [1], [0, 0, 1, 1], [], []>} : vector<16x3072xbf16>, vector<3072x128xbf16>, vector<16x128xf32> -> vector<16x128xf32>
    %c0_3 = arith.constant 0 : index
    %c0_4 = arith.constant 0 : index
    %3 = vector.load %arg3[%c0_3, %c0_4] : memref<1x128xf32, #tpu.memory_space<vmem>>, vector<1x128xf32>
    %4 = vector.broadcast %3 : vector<1x128xf32> to vector<16x128xf32>
    %5 = arith.addf %2, %4 : vector<16x128xf32>
    %c0_5 = arith.constant 0 : index
    %c0_6 = arith.constant 0 : index
    %6 = vector.load %arg4[%c0_5, %c0_6] : memref<16x128xf32, #tpu.memory_space<vmem>>, vector<16x128xf32>
    tpu.vector_store %arg4[%c0_5, %c0_6], %5 {strides = array<i32>} : memref<16x128xf32, #tpu.memory_space<vmem>>, vector<16x128xf32>,
    return
  }
  func.func @transform_0(%arg0: i32) -> (i32, i32) {
    %c0_i32 = arith.constant 0 : i32
    %c0_i32_0 = arith.constant 0 : i32
    return %arg0, %c0_i32 : i32, i32
  }
  func.func @transform_1(%arg0: i32) -> (i32, i32) {
    %c0_i32 = arith.constant 0 : i32
    %c0_i32_0 = arith.constant 0 : i32
    %c0_i32_1 = arith.constant 0 : i32
    return %c0_i32, %c0_i32_0 : i32, i32
  }
  func.func @transform_2(%arg0: i32) -> (i32, i32) {
    %c0_i32 = arith.constant 0 : i32
    %c0_i32_0 = arith.constant 0 : i32
    %c0_i32_1 = arith.constant 0 : i32
    return %c0_i32, %c0_i32_0 : i32, i32
  }
  func.func @transform_3(%arg0: i32) -> (i32, i32) {
    %c0_i32 = arith.constant 0 : i32
    %c0_i32_0 = arith.constant 0 : i32
    return %arg0, %c0_i32 : i32, i32
  }
}

</mosaic_0001>

<bundles_post_ra>
// kernel: tpu_custom_call.1
= control target key start
LH: loop header
LB: loop body
LE: loop exit
PB: predicated region body
PF: predicated region fallthrough
CT: control target
= control target key end

     0   :  { %8 = vsyncpa [#allocation3], 0  ;;  %s3065_s0 = inlined_call_operand.hbm [shape: bf16[16,3072], index: 0, kind: input, shape index: {}]   ;;  %s3066_s1 = inlined_call_operand.hbm [shape: bf16[3072,128], index: 1, kind: input, shape index: {}]   ;;  %s3067_s2 = inlined_call_operand.vmem [shape: f32[1,128], index: 2, kind: input, shape index: {}]   ;;  %s3068_s3 = inlined_call_operand.hbm [shape: f32[16,128], index: 3, kind: output, shape index: {}]  }
   0x1   :  { %9 = vsyncpa [#allocation6], 0 }
   0x2   :  { %10 = vsyncpa [#allocation4], 0  ;;  %s2997_s12 = smov [#allocation2]   ;;  %s2925_s16 = scalar_lea.hbm %s3065_s0, 3072 }
   0x3   :  { %s16_s13 = sshll.u32 %s2997_s12, 4  ;;  %p2926_p0 = scmp.ne.s32.totalorder %s3065_s0, %s2925_s16  ;;  %s17_s13 = int_to_ptr.vmem [resolvable:$true] %s16_s13 }
   0x4   :  { %p2929_p1 = scmp.lt.u32.totalorder %s2925_s16, %s3065_s0 }
   0x6   :  { %p2931_p2 = pnand %p2929_p1, %p2926_p0 }
   0x8   :  { %2934 = shalt.err (!%p2931_p2)
}
   0x9   :  { %s2935_s21 = scalar_lea.vmem %s17_s13, 3072  ;;  %p2940_p4 = scmp.lt.s32.totalorder %s17_s13, %s17_s13 }
   0xa   :  { %p2936_p3 = scmp.ne.s32.totalorder %s17_s13, %s2935_s21  ;;  %p2941_p5 = scmp.lt.s32.totalorder %s2935_s21, %s2935_s21 }
   0xc   :  { %p2942_p6 = por %p2941_p5, %p2940_p4 }
   0xe   :  { %p2943_p7 = pnand %p2942_p6, %p2936_p3 }
  0x10   :  { %2946 = shalt.err (!%p2943_p7)
}
  0x11   :  { %s2998_s22 = smov 1536   ;;  %s2999_s23 = smov 96  }
  0x12   :  { %22 = dma.hbm_to_vmem [thread:$0]  %s3065_s0, 3072, %s17_s13, [#allocation3], %s2998_s22, %s2998_s22, %s2999_s23  }
  0x13   :  { %s3000_s26 = smov [#allocation5]   ;;  %s2947_s30 = scalar_lea.hbm %s3066_s1, 24576 }
  0x14   :  { %s28_s27 = sshll.u32 %s3000_s26, 4  ;;  %p2948_p8 = scmp.ne.s32.totalorder %s3066_s1, %s2947_s30  ;;  %s29_s27 = int_to_ptr.vmem [resolvable:$true] %s28_s27 }
  0x15   :  { %p2951_p9 = scmp.lt.u32.totalorder %s2947_s30, %s3066_s1 }
  0x17   :  { %p2953_p10 = pnand %p2951_p9, %p2948_p8 }
  0x19   :  { %2956 = shalt.err (!%p2953_p10)
}
  0x1a   :  { %s2957_s8 = scalar_lea.vmem %s29_s27, 24576  ;;  %p2962_p12 = scmp.lt.s32.totalorder %s29_s27, %s29_s27 }
  0x1b   :  { %p2958_p11 = scmp.ne.s32.totalorder %s29_s27, %s2957_s8  ;;  %p2963_p13 = scmp.lt.s32.totalorder %s2957_s8, %s2957_s8 }
  0x1d   :  { %p2964_p0 = por %p2963_p13, %p2962_p12 }
  0x1f   :  { %p2965_p1 = pnand %p2964_p0, %p2958_p11 }
  0x21   :  { %2968 = shalt.err (!%p2965_p1)
}
  0x22   :  { %s3001_s0 = smov 64   ;;  %s3002_s9 = smov 4  }
  0x23   :  { %34 = dma.hbm_to_vmem [thread:$0]  %s3066_s1, 24576, %s29_s27, [#allocation6], %s3001_s0, %s3001_s0, %s3002_s9  }
  0x24   :  { %2991 = dma.done.wait [#allocation3], 3072  }
  0x25   :  { %2992 = vsyncadd [#allocation3], 4294964224 }
  0x26   :  { %2993 = dma.done.wait [#allocation6], 24576  }
  0x27   :  { %2994 = vsyncadd [#allocation6], 4294942720  ;;  %v2733_v0 = vld [vmem:[#allocation5 + $0x40] sm:$0xff]   ;;  %v2737_v4 = vld [vmem:[#allocation5 + $0x48] sm:$0xff]  }
  0x28   :  { %v2734_v1 = vld [vmem:[#allocation5 + $0xc0] sm:$0xff]   ;;  %2460 = vmatprep.subr.bf16.mxu0 %v2733_v0  ;;  %v2738_v5 = vld [vmem:[#allocation5 + $0xc8] sm:$0xff]   ;;  %v2741_v8 = vld [vmem:[#allocation5 + $0x50] sm:$0xff]  }
  0x29   :  { %v2735_v2 = vld [vmem:[#allocation5] sm:$0xff]   ;;  %2482 = vmatprep.subr.bf16.mxu1 %v2734_v1  ;;  %v2739_v6 = vld [vmem:[#allocation5 + $0x8] sm:$0xff]   ;;  %v2742_v9 = vld [vmem:[#allocation5 + $0xd0] sm:$0xff]  }
  0x2a   :  { %v2736_v3 = vld [vmem:[#allocation5 + $0x80] sm:$0xff]   ;;  %2461 = vmatpush3.bf16.msra.mxu0 %v2735_v2  ;;  %v2740_v7 = vld [vmem:[#allocation5 + $0x88] sm:$0xff]   ;;  %v2743_v10 = vld [vmem:[#allocation5 + $0x10] sm:$0xff]  }
  0x2b   :  { %2483 = vmatpush3.bf16.msra.mxu1 %v2736_v3  ;;  %2462 = vmatprep.subr.bf16.mxu0 %v2737_v4  ;;  %v2744_v11 = vld [vmem:[#allocation5 + $0x90] sm:$0xff]   ;;  %v2745_v12 = vld [vmem:[#allocation5 + $0x58] sm:$0xff]   ;;  %v2749_v16 = vld [vmem:[#allocation5 + $0x60] sm:$0xff]  }
  0x2c   :  { %2484 = vmatprep.subr.bf16.mxu1 %v2738_v5  ;;  %v2746_v13 = vld [vmem:[#allocation5 + $0xd8] sm:$0xff]   ;;  %v2750_v17 = vld [vmem:[#allocation5 + $0xe0] sm:$0xff]   ;;  %v2753_v20 = vld [vmem:[#allocation5 + $0x68] sm:$0xff]  }
  0x2d   :  { %v2747_v14 = vld [vmem:[#allocation5 + $0x18] sm:$0xff]   ;;  %v2751_v18 = vld [vmem:[#allocation5 + $0x20] sm:$0xff]   ;;  %v2754_v21 = vld [vmem:[#allocation5 + $0xe8] sm:$0xff]  }
  0x2e   :  { %2463 = vmatpush3.bf16.msra.mxu0 %v2739_v6  ;;  %v2748_v15 = vld [vmem:[#allocation5 + $0x98] sm:$0xff]   ;;  %v2752_v19 = vld [vmem:[#allocation5 + $0xa0] sm:$0xff]   ;;  %v2755_v22 = vld [vmem:[#allocation5 + $0x28] sm:$0xff]  }
  0x2f   :  { %2485 = vmatpush3.bf16.msra.mxu1 %v2740_v7  ;;  %2464 = vmatprep.subr.bf16.mxu0 %v2741_v8  ;;  %v2756_v23 = vld [vmem:[#allocation5 + $0xa8] sm:$0xff]   ;;  %v2757_v24 = vld [vmem:[#allocation5 + $0x70] sm:$0xff]   ;;  %v2761_v28 = vld [vmem:[#allocation5 + $0x78] sm:$0xff]  }
  0x30   :  { %2486 = vmatprep.subr.bf16.mxu1 %v2742_v9  ;;  %v2758_v25 = vld [vmem:[#allocation5 + $0xf0] sm:$0xff]   ;;  %v2762_v29 = vld [vmem:[#allocation5 + $0xf8] sm:$0xff]   ;;  %v44_v32 = vld [vmem:[#allocation2] sm:$0xff] }
  0x31   :  { %v2759_v26 = vld [vmem:[#allocation5 + $0x30] sm:$0xff]   ;;  %v2763_v30 = vld [vmem:[#allocation5 + $0x38] sm:$0xff]   ;;  %v56_v33 = vld [vmem:[#allocation2 + $0x60] sm:$0xff] }
  0x32   :  { %2465 = vmatpush3.bf16.msra.mxu0 %v2743_v10  ;;  %v2760_v27 = vld [vmem:[#allocation5 + $0xb0] sm:$0xff]   ;;  %v2764_v31 = vld [vmem:[#allocation5 + $0xb8] sm:$0xff]   ;;  %v45_v34 = vld [vmem:[#allocation2 + $0x8] sm:$0xff]  ;;  %v2244_v35 = vcombine.low %v44_v32, %v56_v33  ;;  %v2245_v36 = vcombine.high %v44_v32, %v56_v33 }
  0x33   :  { %2487 = vmatpush3.bf16.msra.mxu1 %v2744_v11  ;;  %2466 = vmatprep.subr.bf16.mxu0 %v2745_v12  ;;  %v57_v37 = vld [vmem:[#allocation2 + $0x68] sm:$0xff]  ;;  %v2765_v40 = vld [vmem:[#allocation5 + $0x140] sm:$0xff]   ;;  %v2773_v48 = vld [vmem:[#allocation5 + $0x150] sm:$0xff]  }
  0x34   :  { %2488 = vmatprep.subr.bf16.mxu1 %v2746_v13  ;;  %v2246_v38 = vcombine.low %v45_v34, %v57_v37  ;;  %v2247_v39 = vcombine.high %v45_v34, %v57_v37  ;;  %1763 = vmatprep.mubr.bf16.mxu0 %v2245_v36  ;;  %v2766_v41 = vld [vmem:[#allocation5 + $0x1c0] sm:$0xff]   ;;  %v2769_v44 = vld [vmem:[#allocation5 + $0x148] sm:$0xff]   ;;  %v2774_v49 = vld [vmem:[#allocation5 + $0x1d0] sm:$0xff]  }
  0x35   :  { %v2767_v42 = vld [vmem:[#allocation5 + $0x100] sm:$0xff]   ;;  %v2770_v45 = vld [vmem:[#allocation5 + $0x1c8] sm:$0xff]   ;;  %v2775_v50 = vld [vmem:[#allocation5 + $0x110] sm:$0xff]  }
  0x36   :  { %2467 = vmatpush3.bf16.msra.mxu0 %v2747_v14  ;;  %1804 = vmatprep.mubr.bf16.mxu1 %v2247_v39  ;;  %v2768_v43 = vld [vmem:[#allocation5 + $0x180] sm:$0xff]   ;;  %v2771_v46 = vld [vmem:[#allocation5 + $0x108] sm:$0xff]   ;;  %v2776_v51 = vld [vmem:[#allocation5 + $0x190] sm:$0xff]  }
  0x37   :  { %2489 = vmatpush3.bf16.msra.mxu1 %v2748_v15  ;;  %2468 = vmatprep.subr.bf16.mxu0 %v2749_v16  ;;  %v2772_v47 = vld [vmem:[#allocation5 + $0x188] sm:$0xff]   ;;  %v2777_v52 = vld [vmem:[#allocation5 + $0x158] sm:$0xff]   ;;  %v2781_v56 = vld [vmem:[#allocation5 + $0x160] sm:$0xff]  }
  0x38   :  { %2490 = vmatprep.subr.bf16.mxu1 %v2750_v17  ;;  %v2778_v53 = vld [vmem:[#allocation5 + $0x1d8] sm:$0xff]   ;;  %v2782_v57 = vld [vmem:[#allocation5 + $0x1e0] sm:$0xff]   ;;  %v2785_v60 = vld [vmem:[#allocation5 + $0x168] sm:$0xff]  }
  0x39   :  { %v2779_v54 = vld [vmem:[#allocation5 + $0x118] sm:$0xff]   ;;  %v2783_v58 = vld [vmem:[#allocation5 + $0x120] sm:$0xff]   ;;  %v2786_v61 = vld [vmem:[#allocation5 + $0x1e8] sm:$0xff]  }
  0x3a   :  { %2469 = vmatpush3.bf16.msra.mxu0 %v2751_v18  ;;  %v2780_v55 = vld [vmem:[#allocation5 + $0x198] sm:$0xff]   ;;  %v2784_v59 = vld [vmem:[#allocation5 + $0x1a0] sm:$0xff]   ;;  %v2787_v62 = vld [vmem:[#allocation5 + $0x128] sm:$0xff]  }
  0x3b   :  { %2491 = vmatpush3.bf16.msra.mxu1 %v2752_v19  ;;  %2470 = vmatprep.subr.bf16.mxu0 %v2753_v20  ;;  %v2788_v63 = vld [vmem:[#allocation5 + $0x1a8] sm:$0xff]   ;;  %v2789_v0 = vld [vmem:[#allocation5 + $0x170] sm:$0xff]   ;;  %v2793_v4 = vld [vmem:[#allocation5 + $0x178] sm:$0xff]  }
  0x3c   :  { %2492 = vmatprep.subr.bf16.mxu1 %v2754_v21  ;;  %v2790_v1 = vld [vmem:[#allocation5 + $0x1f0] sm:$0xff]   ;;  %v2794_v5 = vld [vmem:[#allocation5 + $0x1f8] sm:$0xff]   ;;  %v2797_v16 = vld [vmem:[#allocation5 + $0x240] sm:$0xff]  }
  0x3d   :  { %v2791_v2 = vld [vmem:[#allocation5 + $0x130] sm:$0xff]   ;;  %v2795_v6 = vld [vmem:[#allocation5 + $0x138] sm:$0xff]   ;;  %v2798_v17 = vld [vmem:[#allocation5 + $0x2c0] sm:$0xff]  }
  0x3e   :  { %2471 = vmatpush3.bf16.msra.mxu0 %v2755_v22  ;;  %v2792_v3 = vld [vmem:[#allocation5 + $0x1b0] sm:$0xff]   ;;  %v2796_v7 = vld [vmem:[#allocation5 + $0x1b8] sm:$0xff]   ;;  %v2799_v18 = vld [vmem:[#allocation5 + $0x200] sm:$0xff]  }
  0x3f   :  { %2493 = vmatpush3.bf16.msra.mxu1 %v2756_v23  ;;  %2472 = vmatprep.subr.bf16.mxu0 %v2757_v24  ;;  %v46_v8 = vld [vmem:[#allocation2 + $0x10] sm:$0xff]  ;;  %v47_v12 = vld [vmem:[#allocation2 + $0x18] sm:$0xff]  ;;  %v2800_v19 = vld [vmem:[#allocation5 + $0x280] sm:$0xff]  }
  0x40   :  { %2494 = vmatprep.subr.bf16.mxu1 %v2758_v25  ;;  %v58_v9 = vld [vmem:[#allocation2 + $0x70] sm:$0xff]  ;;  %v59_v13 = vld [vmem:[#allocation2 + $0x78] sm:$0xff]  ;;  %v2801_v20 = vld [vmem:[#allocation5 + $0x248] sm:$0xff]  }
  0x41   :  { %v2248_v10 = vcombine.low %v46_v8, %v58_v9  ;;  %v2249_v11 = vcombine.high %v46_v8, %v58_v9  ;;  %v2250_v14 = vcombine.low %v47_v12, %v59_v13  ;;  %v2251_v15 = vcombine.high %v47_v12, %v59_v13  ;;  %v2802_v21 = vld [vmem:[#allocation5 + $0x2c8] sm:$0xff]   ;;  %v2805_v24 = vld [vmem:[#allocation5 + $0x250] sm:$0xff]   ;;  %v2813_v32 = vld [vmem:[#allocation5 + $0x260] sm:$0xff]  }
  0x42   :  { %2473 = vmatpush3.bf16.msra.mxu0 %v2759_v26  ;;  %v2803_v22 = vld [vmem:[#allocation5 + $0x208] sm:$0xff]   ;;  %v2806_v25 = vld [vmem:[#allocation5 + $0x2d0] sm:$0xff]   ;;  %v2814_v33 = vld [vmem:[#allocation5 + $0x2e0] sm:$0xff]  }
  0x43   :  { %2495 = vmatpush3.bf16.msra.mxu1 %v2760_v27  ;;  %2474 = vmatprep.subr.bf16.mxu0 %v2761_v28  ;;  %v2804_v23 = vld [vmem:[#allocation5 + $0x288] sm:$0xff]   ;;  %v2807_v26 = vld [vmem:[#allocation5 + $0x210] sm:$0xff]   ;;  %v2809_v28 = vld [vmem:[#allocation5 + $0x258] sm:$0xff]  }
  0x44   :  { %2496 = vmatprep.subr.bf16.mxu1 %v2762_v29  ;;  %v2808_v27 = vld [vmem:[#allocation5 + $0x290] sm:$0xff]   ;;  %v2810_v29 = vld [vmem:[#allocation5 + $0x2d8] sm:$0xff]   ;;  %v2815_v34 = vld [vmem:[#allocation5 + $0x220] sm:$0xff]  }
  0x45   :  { %v2817_v36 = vld [vmem:[#allocation5 + $0x268] sm:$0xff]   ;;  %v2845_v8 = vld [vmem:[#allocation5 + $0x360] sm:$0xff]  }
  0x46   :  { %2475 = vmatpush3.bf16.msra.mxu0 %v2763_v30  ;;  %v2811_v30 = vld [vmem:[#allocation5 + $0x218] sm:$0xff]   ;;  %v2818_v37 = vld [vmem:[#allocation5 + $0x2e8] sm:$0xff]   ;;  %v2846_v9 = vld [vmem:[#allocation5 + $0x3e0] sm:$0xff]  }
  0x47   :  { %2497 = vmatpush3.bf16.msra.mxu1 %v2764_v31  ;;  %2504 = vmatprep.subr.bf16.mxu0 %v2765_v40  ;;  %v2812_v31 = vld [vmem:[#allocation5 + $0x298] sm:$0xff]   ;;  %v2820_v39 = vld [vmem:[#allocation5 + $0x2a8] sm:$0xff]   ;;  %v2821_v40 = vld [vmem:[#allocation5 + $0x270] sm:$0xff]  }
  0x48   :  { %2526 = vmatprep.subr.bf16.mxu1 %v2766_v41  ;;  %v2822_v41 = vld [vmem:[#allocation5 + $0x2f0] sm:$0xff]   ;;  %v2849_v12 = vld [vmem:[#allocation5 + $0x368] sm:$0xff]  }
  0x49   :  { %1764 = vmatmul.mubr.bf16.vlgmr.msra.gmra.mrb[0].mxu0 %v2244_v35  ;;  %v2816_v35 = vld [vmem:[#allocation5 + $0x2a0] sm:$0xff]   ;;  %v2850_v13 = vld [vmem:[#allocation5 + $0x3e8] sm:$0xff]  }
  0x4a   :  { %1805 = vmatmul.mubr.bf16.vlgmr.msra.gmra.mrb[0].mxu1 %v2246_v38  ;;  %2505 = vmatpush3.bf16.msra.mxu0 %v2767_v42  ;;  %v2819_v38 = vld [vmem:[#allocation5 + $0x228] sm:$0xff]   ;;  %v2823_v42 = vld [vmem:[#allocation5 + $0x230] sm:$0xff]  }
  0x4b   :  { %2527 = vmatpush3.bf16.msra.mxu1 %v2768_v43  ;;  %2506 = vmatprep.subr.bf16.mxu0 %v2769_v44  ;;  %v2824_v43 = vld [vmem:[#allocation5 + $0x2b0] sm:$0xff]   ;;  %v2825_v44 = vld [vmem:[#allocation5 + $0x278] sm:$0xff]  }
  0x4c   :  { %2528 = vmatprep.subr.bf16.mxu1 %v2770_v45  ;;  %1845 = vmatprep.mubr.bf16.mxu0 %v2249_v11  ;;  %v2826_v45 = vld [vmem:[#allocation5 + $0x2f8] sm:$0xff]   ;;  %v2848_v11 = vld [vmem:[#allocation5 + $0x3a0] sm:$0xff]  }
  0x4d   :  { %1886 = vmatprep.mubr.bf16.mxu1 %v2251_v15  ;;  %v2852_v15 = vld [vmem:[#allocation5 + $0x3a8] sm:$0xff]  }
  0x4e   :  { %2507 = vmatpush3.bf16.msra.mxu0 %v2771_v46  ;;  %v2827_v46 = vld [vmem:[#allocation5 + $0x238] sm:$0xff]  }
  0x4f   :  { %2529 = vmatpush3.bf16.msra.mxu1 %v2772_v47  ;;  %2508 = vmatprep.subr.bf16.mxu0 %v2773_v48  ;;  %v2828_v47 = vld [vmem:[#allocation5 + $0x2b8] sm:$0xff]   ;;  %v48_v48 = vld [vmem:[#allocation2 + $0x20] sm:$0xff] }
  0x50   :  { %2530 = vmatprep.subr.bf16.mxu1 %v2774_v49  ;;  %v60_v49 = vld [vmem:[#allocation2 + $0x80] sm:$0xff] }
  0x52   :  { %2509 = vmatpush3.bf16.msra.mxu0 %v2775_v50  ;;  %v49_v50 = vld [vmem:[#allocation2 + $0x28] sm:$0xff] }
  0x53   :  { %2531 = vmatpush3.bf16.msra.mxu1 %v2776_v51  ;;  %2510 = vmatprep.subr.bf16.mxu0 %v2777_v52  ;;  %v61_v51 = vld [vmem:[#allocation2 + $0x88] sm:$0xff]  ;;  %v2252_v52 = vcombine.low %v48_v48, %v60_v49 }
  0x54   :  { %2532 = vmatprep.subr.bf16.mxu1 %v2778_v53  ;;  %v2253_v53 = vcombine.high %v48_v48, %v60_v49  ;;  %v2877_v48 = vld [vmem:[#allocation5 + $0x460] sm:$0xff]  }
  0x55   :  { %v2878_v49 = vld [vmem:[#allocation5 + $0x4e0] sm:$0xff]  }
  0x56   :  { %2511 = vmatpush3.bf16.msra.mxu0 %v2779_v54  ;;  %v2254_v54 = vcombine.low %v49_v50, %v61_v51 }
  0x57   :  { %2533 = vmatpush3.bf16.msra.mxu1 %v2780_v55  ;;  %2512 = vmatprep.subr.bf16.mxu0 %v2781_v56  ;;  %v2255_v55 = vcombine.high %v49_v50, %v61_v51  ;;  %v2829_v56 = vld [vmem:[#allocation5 + $0x340] sm:$0xff]  }
  0x58   :  { %2534 = vmatprep.subr.bf16.mxu1 %v2782_v57  ;;  %v2830_v57 = vld [vmem:[#allocation5 + $0x3c0] sm:$0xff]  }
  0x59   :  { %v2879_v50 = vld [vmem:[#allocation5 + $0x420] sm:$0xff]  }
  0x5a   :  { %2513 = vmatpush3.bf16.msra.mxu0 %v2783_v58  ;;  %v2831_v58 = vld [vmem:[#allocation5 + $0x300] sm:$0xff]  }
  0x5b   :  { %2535 = vmatpush3.bf16.msra.mxu1 %v2784_v59  ;;  %2514 = vmatprep.subr.bf16.mxu0 %v2785_v60  ;;  %v2832_v59 = vld [vmem:[#allocation5 + $0x380] sm:$0xff]   ;;  %v2833_v60 = vld [vmem:[#allocation5 + $0x348] sm:$0xff]  }
  0x5c   :  { %2536 = vmatprep.subr.bf16.mxu1 %v2786_v61  ;;  %v2834_v61 = vld [vmem:[#allocation5 + $0x3c8] sm:$0xff]   ;;  %v2880_v51 = vld [vmem:[#allocation5 + $0x4a0] sm:$0xff]  }
  0x5e   :  { %2515 = vmatpush3.bf16.msra.mxu0 %v2787_v62  ;;  %v2835_v62 = vld [vmem:[#allocation5 + $0x308] sm:$0xff]  }
  0x5f   :  { %2537 = vmatpush3.bf16.msra.mxu1 %v2788_v63  ;;  %2516 = vmatprep.subr.bf16.mxu0 %v2789_v0  ;;  %v2836_v63 = vld [vmem:[#allocation5 + $0x388] sm:$0xff]   ;;  %v2837_v0 = vld [vmem:[#allocation5 + $0x350] sm:$0xff]  }
  0x60   :  { %2538 = vmatprep.subr.bf16.mxu1 %v2790_v1  ;;  %v2838_v1 = vld [vmem:[#allocation5 + $0x3d0] sm:$0xff]  }
  0x62   :  { %2517 = vmatpush3.bf16.msra.mxu0 %v2791_v2  ;;  %v2839_v2 = vld [vmem:[#allocation5 + $0x310] sm:$0xff]  }
  0x63   :  { %2539 = vmatpush3.bf16.msra.mxu1 %v2792_v3  ;;  %2518 = vmatprep.subr.bf16.mxu0 %v2793_v4  ;;  %v2840_v3 = vld [vmem:[#allocation5 + $0x390] sm:$0xff]   ;;  %v2841_v4 = vld [vmem:[#allocation5 + $0x358] sm:$0xff]  }
  0x64   :  { %2540 = vmatprep.subr.bf16.mxu1 %v2794_v5  ;;  %v2842_v5 = vld [vmem:[#allocation5 + $0x3d8] sm:$0xff]  }
  0x66   :  { %2519 = vmatpush3.bf16.msra.mxu0 %v2795_v6  ;;  %v2843_v6 = vld [vmem:[#allocation5 + $0x318] sm:$0xff]  }
  0x67   :  { %2541 = vmatpush3.bf16.msra.mxu1 %v2796_v7  ;;  %2548 = vmatprep.subr.bf16.mxu0 %v2797_v16  ;;  %v2844_v7 = vld [vmem:[#allocation5 + $0x398] sm:$0xff]   ;;  %v2853_v16 = vld [vmem:[#allocation5 + $0x370] sm:$0xff]  }
  0x68   :  { %2570 = vmatprep.subr.bf16.mxu1 %v2798_v17  ;;  %v2854_v17 = vld [vmem:[#allocation5 + $0x3f0] sm:$0xff]  }
  0x69   :  { %1846 = vmatmul.mubr.bf16.vlgmr.msra.gmra.mrb[4].mxu0 %v2248_v10  ;;  %v2847_v10 = vld [vmem:[#allocation5 + $0x320] sm:$0xff]  }
  0x6a   :  { %1887 = vmatmul.mubr.bf16.vlgmr.msra.gmra.mrb[4].mxu1 %v2250_v14  ;;  %2549 = vmatpush3.bf16.msra.mxu0 %v2799_v18  ;;  %v2851_v14 = vld [vmem:[#allocation5 + $0x328] sm:$0xff]   ;;  %v2855_v18 = vld [vmem:[#allocation5 + $0x330] sm:$0xff]  }
  0x6b   :  { %2571 = vmatpush3.bf16.msra.mxu1 %v2800_v19  ;;  %2550 = vmatprep.subr.bf16.mxu0 %v2801_v20  ;;  %v2856_v19 = vld [vmem:[#allocation5 + $0x3b0] sm:$0xff]   ;;  %v2857_v20 = vld [vmem:[#allocation5 + $0x378] sm:$0xff]  }
  0x6c   :  { %2572 = vmatprep.subr.bf16.mxu1 %v2802_v21  ;;  %1927 = vmatprep.mubr.bf16.mxu0 %v2253_v53  ;;  %v2858_v21 = vld [vmem:[#allocation5 + $0x3f8] sm:$0xff]   ;;  %v2882_v53 = vld [vmem:[#allocation5 + $0x4e8] sm:$0xff]  }
  0x6d   :  { %1968 = vmatprep.mubr.bf16.mxu1 %v2255_v55  ;;  %v2884_v55 = vld [vmem:[#allocation5 + $0x4a8] sm:$0xff]  }
  0x6e   :  { %2551 = vmatpush3.bf16.msra.mxu0 %v2803_v22  ;;  %v2859_v22 = vld [vmem:[#allocation5 + $0x338] sm:$0xff]  }
  0x6f   :  { %2573 = vmatpush3.bf16.msra.mxu1 %v2804_v23  ;;  %2552 = vmatprep.subr.bf16.mxu0 %v2805_v24  ;;  %v2860_v23 = vld [vmem:[#allocation5 + $0x3b8] sm:$0xff]   ;;  %v50_v24 = vld [vmem:[#allocation2 + $0x30] sm:$0xff] }
  0x70   :  { %2574 = vmatprep.subr.bf16.mxu1 %v2806_v25  ;;  %v62_v25 = vld [vmem:[#allocation2 + $0x90] sm:$0xff] }
  0x72   :  { %2553 = vmatpush3.bf16.msra.mxu0 %v2807_v26  ;;  %v51_v26 = vld [vmem:[#allocation2 + $0x38] sm:$0xff] }
  0x73   :  { %2575 = vmatpush3.bf16.msra.mxu1 %v2808_v27  ;;  %2554 = vmatprep.subr.bf16.mxu0 %v2809_v28  ;;  %v2256_v27 = vcombine.low %v50_v24, %v62_v25  ;;  %v2257_v28 = vcombine.high %v50_v24, %v62_v25  ;;  %v2909_v24 = vld [vmem:[#allocation5 + $0x560] sm:$0xff]  }
  0x74   :  { %2576 = vmatprep.subr.bf16.mxu1 %v2810_v29  ;;  %v63_v29 = vld [vmem:[#allocation2 + $0x98] sm:$0xff]  ;;  %v2910_v25 = vld [vmem:[#allocation5 + $0x5e0] sm:$0xff]  }
  0x76   :  { %2555 = vmatpush3.bf16.msra.mxu0 %v2811_v30  ;;  %v2258_v30 = vcombine.low %v51_v26, %v63_v29 }
  0x77   :  { %2577 = vmatpush3.bf16.msra.mxu1 %v2812_v31  ;;  %2556 = vmatprep.subr.bf16.mxu0 %v2813_v32  ;;  %v2259_v31 = vcombine.high %v51_v26, %v63_v29  ;;  %v2861_v32 = vld [vmem:[#allocation5 + $0x440] sm:$0xff]   ;;  %v2914_v29 = vld [vmem:[#allocation5 + $0x5e8] sm:$0xff]  }
  0x78   :  { %2578 = vmatprep.subr.bf16.mxu1 %v2814_v33  ;;  %v2862_v33 = vld [vmem:[#allocation5 + $0x4c0] sm:$0xff]  }
  0x79   :  { %v2911_v26 = vld [vmem:[#allocation5 + $0x520] sm:$0xff]  }
  0x7a   :  { %2557 = vmatpush3.bf16.msra.mxu0 %v2815_v34  ;;  %v2863_v34 = vld [vmem:[#allocation5 + $0x400] sm:$0xff]  }
  0x7b   :  { %2579 = vmatpush3.bf16.msra.mxu1 %v2816_v35  ;;  %2558 = vmatprep.subr.bf16.mxu0 %v2817_v36  ;;  %v2864_v35 = vld [vmem:[#allocation5 + $0x480] sm:$0xff]   ;;  %v2865_v36 = vld [vmem:[#allocation5 + $0x448] sm:$0xff]  }
  0x7c   :  { %2580 = vmatprep.subr.bf16.mxu1 %v2818_v37  ;;  %v2866_v37 = vld [vmem:[#allocation5 + $0x4c8] sm:$0xff]  }
  0x7e   :  { %2559 = vmatpush3.bf16.msra.mxu0 %v2819_v38  ;;  %v2867_v38 = vld [vmem:[#allocation5 + $0x408] sm:$0xff]  }
  0x7f   :  { %2581 = vmatpush3.bf16.msra.mxu1 %v2820_v39  ;;  %2560 = vmatprep.subr.bf16.mxu0 %v2821_v40  ;;  %v2868_v39 = vld [vmem:[#allocation5 + $0x488] sm:$0xff]   ;;  %v2869_v40 = vld [vmem:[#allocation5 + $0x450] sm:$0xff]  }
  0x80   :  { %2582 = vmatprep.subr.bf16.mxu1 %v2822_v41  ;;  %v2870_v41 = vld [vmem:[#allocation5 + $0x4d0] sm:$0xff]  }
  0x82   :  { %2561 = vmatpush3.bf16.msra.mxu0 %v2823_v42  ;;  %v2871_v42 = vld [vmem:[#allocation5 + $0x410] sm:$0xff]  }
  0x83   :  { %2583 = vmatpush3.bf16.msra.mxu1 %v2824_v43  ;;  %2562 = vmatprep.subr.bf16.mxu0 %v2825_v44  ;;  %v2872_v43 = vld [vmem:[#allocation5 + $0x490] sm:$0xff]   ;;  %v2873_v44 = vld [vmem:[#allocation5 + $0x458] sm:$0xff]  }
  0x84   :  { %2584 = vmatprep.subr.bf16.mxu1 %v2826_v45  ;;  %v2874_v45 = vld [vmem:[#allocation5 + $0x4d8] sm:$0xff]  }
  0x86   :  { %2563 = vmatpush3.bf16.msra.mxu0 %v2827_v46  ;;  %v2875_v46 = vld [vmem:[#allocation5 + $0x418] sm:$0xff]  }
  0x87   :  { %2585 = vmatpush3.bf16.msra.mxu1 %v2828_v47  ;;  %2592 = vmatprep.subr.bf16.mxu0 %v2829_v56  ;;  %v2876_v47 = vld [vmem:[#allocation5 + $0x498] sm:$0xff]   ;;  %v2885_v56 = vld [vmem:[#allocation5 + $0x470] sm:$0xff]  }
  0x88   :  { %2614 = vmatprep.subr.bf16.mxu1 %v2830_v57  ;;  %v2886_v57 = vld [vmem:[#allocation5 + $0x4f0] sm:$0xff]  }
  0x89   :  { %1928 = vmatmul.mubr.bf16.vlgmr.msra.gmra.mrb[8].mxu0 %v2252_v52  ;;  %v2881_v52 = vld [vmem:[#allocation5 + $0x468] sm:$0xff]  }
  0x8a   :  { %1969 = vmatmul.mubr.bf16.vlgmr.msra.gmra.mrb[8].mxu1 %v2254_v54  ;;  %2593 = vmatpush3.bf16.msra.mxu0 %v2831_v58  ;;  %v2883_v54 = vld [vmem:[#allocation5 + $0x428] sm:$0xff]   ;;  %v2887_v58 = vld [vmem:[#allocation5 + $0x430] sm:$0xff]  }
  0x8b   :  { %2615 = vmatpush3.bf16.msra.mxu1 %v2832_v59  ;;  %2594 = vmatprep.subr.bf16.mxu0 %v2833_v60  ;;  %v2888_v59 = vld [vmem:[#allocation5 + $0x4b0] sm:$0xff]   ;;  %v2889_v60 = vld [vmem:[#allocation5 + $0x478] sm:$0xff]  }
  0x8c   :  { %2616 = vmatprep.subr.bf16.mxu1 %v2834_v61  ;;  %2009 = vmatprep.mubr.bf16.mxu0 %v2257_v28  ;;  %v2890_v61 = vld [vmem:[#allocation5 + $0x4f8] sm:$0xff]   ;;  %v2913_v28 = vld [vmem:[#allocation5 + $0x568] sm:$0xff]  }
  0x8d   :  { %2050 = vmatprep.mubr.bf16.mxu1 %v2259_v31  ;;  %v2916_v31 = vld [vmem:[#allocation5 + $0x5a8] sm:$0xff]  }
  0x8e   :  { %2595 = vmatpush3.bf16.msra.mxu0 %v2835_v62  ;;  %v2891_v62 = vld [vmem:[#allocation5 + $0x438] sm:$0xff]  }
  0x8f   :  { %2617 = vmatpush3.bf16.msra.mxu1 %v2836_v63  ;;  %2596 = vmatprep.subr.bf16.mxu0 %v2837_v0  ;;  %v2892_v63 = vld [vmem:[#allocation5 + $0x4b8] sm:$0xff]   ;;  %v52_v0 = vld [vmem:[#allocation2 + $0x40] sm:$0xff] }
  0x90   :  { %2618 = vmatprep.subr.bf16.mxu1 %v2838_v1  ;;  %v64_v1 = vld [vmem:[#allocation2 + $0xa0] sm:$0xff] }
  0x92   :  { %2597 = vmatpush3.bf16.msra.mxu0 %v2839_v2  ;;  %v2260_v2 = vcombine.low %v52_v0, %v64_v1 }
  0x93   :  { %2619 = vmatpush3.bf16.msra.mxu1 %v2840_v3  ;;  %2598 = vmatprep.subr.bf16.mxu0 %v2841_v4  ;;  %v2261_v3 = vcombine.high %v52_v0, %v64_v1  ;;  %v53_v4 = vld [vmem:[#allocation2 + $0x48] sm:$0xff] }
  0x94   :  { %2620 = vmatprep.subr.bf16.mxu1 %v2842_v5  ;;  %v65_v5 = vld [vmem:[#allocation2 + $0xa8] sm:$0xff] }
  0x96   :  { %2599 = vmatpush3.bf16.msra.mxu0 %v2843_v6  ;;  %v2262_v6 = vcombine.low %v53_v4, %v65_v5 }
  0x97   :  { %2621 = vmatpush3.bf16.msra.mxu1 %v2844_v7  ;;  %2600 = vmatprep.subr.bf16.mxu0 %v2845_v8  ;;  %v2263_v7 = vcombine.high %v53_v4, %v65_v5  ;;  %v2893_v8 = vld [vmem:[#allocation5 + $0x540] sm:$0xff]  }
  0x98   :  { %2622 = vmatprep.subr.bf16.mxu1 %v2846_v9  ;;  %v2894_v9 = vld [vmem:[#allocation5 + $0x5c0] sm:$0xff]  }
  0x9a   :  { %2601 = vmatpush3.bf16.msra.mxu0 %v2847_v10  ;;  %v2895_v10 = vld [vmem:[#allocation5 + $0x500] sm:$0xff]  }
  0x9b   :  { %2623 = vmatpush3.bf16.msra.mxu1 %v2848_v11  ;;  %2602 = vmatprep.subr.bf16.mxu0 %v2849_v12  ;;  %v2896_v11 = vld [vmem:[#allocation5 + $0x580] sm:$0xff]   ;;  %v2897_v12 = vld [vmem:[#allocation5 + $0x548] sm:$0xff]  }
  0x9c   :  { %2624 = vmatprep.subr.bf16.mxu1 %v2850_v13  ;;  %v2898_v13 = vld [vmem:[#allocation5 + $0x5c8] sm:$0xff]  }
  0x9e   :  { %2603 = vmatpush3.bf16.msra.mxu0 %v2851_v14  ;;  %v2899_v14 = vld [vmem:[#allocation5 + $0x508] sm:$0xff]  }
  0x9f   :  { %2625 = vmatpush3.bf16.msra.mxu1 %v2852_v15  ;;  %2604 = vmatprep.subr.bf16.mxu0 %v2853_v16  ;;  %v2900_v15 = vld [vmem:[#allocation5 + $0x588] sm:$0xff]   ;;  %v2901_v16 = vld [vmem:[#allocation5 + $0x550] sm:$0xff]  }
  0xa0   :  { %2626 = vmatprep.subr.bf16.mxu1 %v2854_v17  ;;  %v2902_v17 = vld [vmem:[#allocation5 + $0x5d0] sm:$0xff]  }
  0xa2   :  { %2605 = vmatpush3.bf16.msra.mxu0 %v2855_v18  ;;  %v2903_v18 = vld [vmem:[#allocation5 + $0x510] sm:$0xff]  }
  0xa3   :  { %2627 = vmatpush3.bf16.msra.mxu1 %v2856_v19  ;;  %2606 = vmatprep.subr.bf16.mxu0 %v2857_v20  ;;  %v2904_v19 = vld [vmem:[#allocation5 + $0x590] sm:$0xff]   ;;  %v2905_v20 = vld [vmem:[#allocation5 + $0x558] sm:$0xff]  }
  0xa4   :  { %2628 = vmatprep.subr.bf16.mxu1 %v2858_v21  ;;  %v2906_v21 = vld [vmem:[#allocation5 + $0x5d8] sm:$0xff]  }
  0xa6   :  { %2607 = vmatpush3.bf16.msra.mxu0 %v2859_v22  ;;  %v2907_v22 = vld [vmem:[#allocation5 + $0x518] sm:$0xff]  }
  0xa7   :  { %2629 = vmatpush3.bf16.msra.mxu1 %v2860_v23  ;;  %2636 = vmatprep.subr.bf16.mxu0 %v2861_v32  ;;  %v2908_v23 = vld [vmem:[#allocation5 + $0x598] sm:$0xff]   ;;  %v2917_v32 = vld [vmem:[#allocation5 + $0x570] sm:$0xff]  }
  0xa8   :  { %2658 = vmatprep.subr.bf16.mxu1 %v2862_v33  ;;  %v2918_v33 = vld [vmem:[#allocation5 + $0x5f0] sm:$0xff]  }
  0xa9   :  { %2010 = vmatmul.mubr.bf16.vlgmr.msra.gmra.mrb[12].mxu0 %v2256_v27  ;;  %v2912_v27 = vld [vmem:[#allocation5 + $0x5a0] sm:$0xff]  }
  0xaa   :  { %2051 = vmatmul.mubr.bf16.vlgmr.msra.gmra.mrb[12].mxu1 %v2258_v30  ;;  %2637 = vmatpush3.bf16.msra.mxu0 %v2863_v34  ;;  %v2915_v30 = vld [vmem:[#allocation5 + $0x528] sm:$0xff]   ;;  %v2919_v34 = vld [vmem:[#allocation5 + $0x530] sm:$0xff]  }
  0xab   :  { %2659 = vmatpush3.bf16.msra.mxu1 %v2864_v35  ;;  %2638 = vmatprep.subr.bf16.mxu0 %v2865_v36  ;;  %v2920_v35 = vld [vmem:[#allocation5 + $0x5b0] sm:$0xff]   ;;  %v2921_v36 = vld [vmem:[#allocation5 + $0x578] sm:$0xff]  }
  0xac   :  { %2660 = vmatprep.subr.bf16.mxu1 %v2866_v37  ;;  %2091 = vmatprep.mubr.bf16.mxu0 %v2261_v3  ;;  %v2922_v37 = vld [vmem:[#allocation5 + $0x5f8] sm:$0xff]  }
  0xad   :  { %2132 = vmatprep.mubr.bf16.mxu1 %v2263_v7 }
  0xae   :  { %2639 = vmatpush3.bf16.msra.mxu0 %v2867_v38  ;;  %v2923_v38 = vld [vmem:[#allocation5 + $0x538] sm:$0xff]  }
  0xaf   :  { %2661 = vmatpush3.bf16.msra.mxu1 %v2868_v39  ;;  %2640 = vmatprep.subr.bf16.mxu0 %v2869_v40  ;;  %v2924_v39 = vld [vmem:[#allocation5 + $0x5b8] sm:$0xff]   ;;  %v54_v40 = vld [vmem:[#allocation2 + $0x50] sm:$0xff] }
  0xb0   :  { %2662 = vmatprep.subr.bf16.mxu1 %v2870_v41  ;;  %v66_v41 = vld [vmem:[#allocation2 + $0xb0] sm:$0xff] }
  0xb2   :  { %2641 = vmatpush3.bf16.msra.mxu0 %v2871_v42  ;;  %v55_v42 = vld [vmem:[#allocation2 + $0x58] sm:$0xff] }
  0xb3   :  { %2663 = vmatpush3.bf16.msra.mxu1 %v2872_v43  ;;  %2642 = vmatprep.subr.bf16.mxu0 %v2873_v44  ;;  %v67_v43 = vld [vmem:[#allocation2 + $0xb8] sm:$0xff]  ;;  %v2264_v44 = vcombine.low %v54_v40, %v66_v41 }
  0xb4   :  { %2664 = vmatprep.subr.bf16.mxu1 %v2874_v45  ;;  %v2265_v45 = vcombine.high %v54_v40, %v66_v41 }
  0xb6   :  { %2643 = vmatpush3.bf16.msra.mxu0 %v2875_v46  ;;  %v2266_v46 = vcombine.low %v55_v42, %v67_v43 }
  0xb7   :  { %2665 = vmatpush3.bf16.msra.mxu1 %v2876_v47  ;;  %2644 = vmatprep.subr.bf16.mxu0 %v2877_v48  ;;  %v2267_v47 = vcombine.high %v55_v42, %v67_v43 }
  0xb8   :  { %2666 = vmatprep.subr.bf16.mxu1 %v2878_v49 }
  0xba   :  { %2645 = vmatpush3.bf16.msra.mxu0 %v2879_v50  ;;  %v2243_v50 = vld [vmem:[%s3067_s2] ss:$0 sm:$0xff]  ;;  %s3003_s2 = smov [#allocation7]  }
  0xbb   :  { %2667 = vmatpush3.bf16.msra.mxu1 %v2880_v51  ;;  %2646 = vmatprep.subr.bf16.mxu0 %v2881_v52  ;;  %s2230_s13 = sshll.u32 %s3003_s2, 4  ;;  %s2231_s13 = int_to_ptr.vmem [resolvable:$true] %s2230_s13 }
  0xbc   :  { %2668 = vmatprep.subr.bf16.mxu1 %v2882_v53  ;;  %s2969_s14 = scalar_lea.vmem %s2231_s13, 256  ;;  %p2974_p3 = scmp.lt.s32.totalorder %s2231_s13, %s2231_s13 }
  0xbd   :  { %p2970_p2 = scmp.ne.s32.totalorder %s2231_s13, %s2969_s14  ;;  %p2975_p4 = scmp.lt.s32.totalorder %s2969_s14, %s2969_s14 }
  0xbe   :  { %2647 = vmatpush3.bf16.msra.mxu0 %v2883_v54 }
  0xbf   :  { %2669 = vmatpush3.bf16.msra.mxu1 %v2884_v55  ;;  %2648 = vmatprep.subr.bf16.mxu0 %v2885_v56  ;;  %p2976_p5 = por %p2975_p4, %p2974_p3 }
  0xc0   :  { %2670 = vmatprep.subr.bf16.mxu1 %v2886_v57 }
  0xc1   :  { %p2977_p6 = pnand %p2976_p5, %p2970_p2 }
  0xc2   :  { %2649 = vmatpush3.bf16.msra.mxu0 %v2887_v58 }
  0xc3   :  { %2671 = vmatpush3.bf16.msra.mxu1 %v2888_v59  ;;  %2650 = vmatprep.subr.bf16.mxu0 %v2889_v60 }
  0xc4   :  { %2672 = vmatprep.subr.bf16.mxu1 %v2890_v61 }
  0xc6   :  { %2651 = vmatpush3.bf16.msra.mxu0 %v2891_v62 }
  0xc7   :  { %2673 = vmatpush3.bf16.msra.mxu1 %v2892_v63  ;;  %2680 = vmatprep.subr.bf16.mxu0 %v2893_v8 }
  0xc8   :  { %2702 = vmatprep.subr.bf16.mxu1 %v2894_v9 }
  0xc9   :  { %2092 = vmatmul.mubr.bf16.vlgmr.msra.gmra.mrb[16].mxu0 %v2260_v2 }
  0xca   :  { %2133 = vmatmul.mubr.bf16.vlgmr.msra.gmra.mrb[16].mxu1 %v2262_v6  ;;  %2681 = vmatpush3.bf16.msra.mxu0 %v2895_v10 }
  0xcb   :  { %2703 = vmatpush3.bf16.msra.mxu1 %v2896_v11  ;;  %2682 = vmatprep.subr.bf16.mxu0 %v2897_v12 }
  0xcc   :  { %2704 = vmatprep.subr.bf16.mxu1 %v2898_v13  ;;  %2173 = vmatprep.mubr.bf16.mxu0 %v2265_v45 }
  0xcd   :  { %2214 = vmatprep.mubr.bf16.mxu1 %v2267_v47 }
  0xce   :  { %2683 = vmatpush3.bf16.msra.mxu0 %v2899_v14 }
  0xcf   :  { %2705 = vmatpush3.bf16.msra.mxu1 %v2900_v15  ;;  %2684 = vmatprep.subr.bf16.mxu0 %v2901_v16 }
  0xd0   :  { %2706 = vmatprep.subr.bf16.mxu1 %v2902_v17 }
  0xd2   :  { %2685 = vmatpush3.bf16.msra.mxu0 %v2903_v18 }
  0xd3   :  { %2707 = vmatpush3.bf16.msra.mxu1 %v2904_v19  ;;  %2686 = vmatprep.subr.bf16.mxu0 %v2905_v20 }
  0xd4   :  { %2708 = vmatprep.subr.bf16.mxu1 %v2906_v21 }
  0xd6   :  { %2687 = vmatpush3.bf16.msra.mxu0 %v2907_v22 }
  0xd7   :  { %2709 = vmatpush3.bf16.msra.mxu1 %v2908_v23  ;;  %2688 = vmatprep.subr.bf16.mxu0 %v2909_v24 }
  0xd8   :  { %2710 = vmatprep.subr.bf16.mxu1 %v2910_v25 }
  0xda   :  { %2689 = vmatpush3.bf16.msra.mxu0 %v2911_v26 }
  0xdb   :  { %2711 = vmatpush3.bf16.msra.mxu1 %v2912_v27  ;;  %2690 = vmatprep.subr.bf16.mxu0 %v2913_v28 }
  0xdc   :  { %2712 = vmatprep.subr.bf16.mxu1 %v2914_v29 }
  0xde   :  { %2691 = vmatpush3.bf16.msra.mxu0 %v2915_v30 }
  0xdf   :  { %2713 = vmatpush3.bf16.msra.mxu1 %v2916_v31  ;;  %2692 = vmatprep.subr.bf16.mxu0 %v2917_v32 }
  0xe0   :  { %2714 = vmatprep.subr.bf16.mxu1 %v2918_v33 }
  0xe2   :  { %2693 = vmatpush3.bf16.msra.mxu0 %v2919_v34 }
  0xe3   :  { %2715 = vmatpush3.bf16.msra.mxu1 %v2920_v35  ;;  %2694 = vmatprep.subr.bf16.mxu0 %v2921_v36 }
  0xe4   :  { %2716 = vmatprep.subr.bf16.mxu1 %v2922_v37 }
  0xe6   :  { %2695 = vmatpush3.bf16.msra.mxu0 %v2923_v38 }
  0xe7   :  { %2717 = vmatpush3.bf16.msra.mxu1 %v2924_v39 }
  0xe9   :  { %2174 = vmatmul.mubr.bf16.vlgmr.msra.gmra.mrb[20].mxu0 %v2264_v44 }
  0xea   :  { %2215 = vmatmul.mubr.bf16.vlgmr.msra.gmra.mrb[20].mxu1 %v2266_v46 }
 0x11c   :  { %v2476_v48 = vpop.f32.mrb[0].mxu0 }
 0x11d   :  { %v2498_v49 = vpop.f32.mrb[0].mxu1  ;;  %v2477_v51 = vpop.f32.mrb[1].mxu0 }
 0x11e   :  { %v2478_v52 = vadd.f32 %v2477_v51, %v2476_v48  ;;  %v2499_v53 = vpop.f32.mrb[1].mxu1  ;;  %v2479_v54 = vpop.f32.mrb[2].mxu0 }
 0x11f   :  { %v2500_v55 = vadd.f32 %v2499_v53, %v2498_v49  ;;  %v2501_v56 = vpop.f32.mrb[2].mxu1  ;;  %v2480_v57 = vpop.f32.mrb[3].mxu0 }
 0x120   :  { %v1766_v58 = vadd.f32 %v2478_v52, %v2243_v50  ;;  %v2481_v59 = vadd.f32 %v2480_v57, %v2479_v54  ;;  %v2502_v60 = vpop.f32.mrb[3].mxu1 }
 0x121   :  { %v2503_v61 = vadd.f32 %v2502_v60, %v2501_v56 }
 0x122   :  { %v1807_v62 = vadd.f32 %v2500_v55, %v1766_v58  ;;  %v1769_v63 = vadd.f32 %v2481_v59, %v2243_v50 }
 0x124   :  { %v1810_v0 = vadd.f32 %v2503_v61, %v1769_v63 }
 0x13c   :  { %v2520_v1 = vpop.f32.mrb[4].mxu0 }
 0x13d   :  { %v2542_v2 = vpop.f32.mrb[4].mxu1  ;;  %v2521_v3 = vpop.f32.mrb[5].mxu0 }
 0x13e   :  { %v2522_v4 = vadd.f32 %v2521_v3, %v2520_v1  ;;  %v2543_v5 = vpop.f32.mrb[5].mxu1  ;;  %v2523_v6 = vpop.f32.mrb[6].mxu0 }
 0x13f   :  { %v2544_v7 = vadd.f32 %v2543_v5, %v2542_v2  ;;  %v2545_v8 = vpop.f32.mrb[6].mxu1  ;;  %v2524_v9 = vpop.f32.mrb[7].mxu0 }
 0x140   :  { %v1848_v10 = vadd.f32 %v2522_v4, %v1807_v62  ;;  %v2525_v11 = vadd.f32 %v2524_v9, %v2523_v6  ;;  %v2546_v12 = vpop.f32.mrb[7].mxu1 }
 0x141   :  { %v2547_v13 = vadd.f32 %v2546_v12, %v2545_v8 }
 0x142   :  { %v1889_v14 = vadd.f32 %v2544_v7, %v1848_v10  ;;  %v1851_v15 = vadd.f32 %v2525_v11, %v1810_v0 }
 0x144   :  { %v1892_v16 = vadd.f32 %v2547_v13, %v1851_v15 }
 0x15c   :  { %v2564_v17 = vpop.f32.mrb[8].mxu0 }
 0x15d   :  { %v2586_v18 = vpop.f32.mrb[8].mxu1  ;;  %v2565_v19 = vpop.f32.mrb[9].mxu0 }
 0x15e   :  { %v2587_v20 = vpop.f32.mrb[9].mxu1  ;;  %v2566_v21 = vadd.f32 %v2565_v19, %v2564_v17  ;;  %v2567_v23 = vpop.f32.mrb[10].mxu0 }
 0x15f   :  { %v2588_v22 = vadd.f32 %v2587_v20, %v2586_v18  ;;  %v2589_v24 = vpop.f32.mrb[10].mxu1  ;;  %v2568_v25 = vpop.f32.mrb[11].mxu0 }
 0x160   :  { %v2590_v26 = vpop.f32.mrb[11].mxu1  ;;  %v1930_v27 = vadd.f32 %v2566_v21, %v1889_v14  ;;  %v2569_v28 = vadd.f32 %v2568_v25, %v2567_v23 }
 0x161   :  { %v2591_v29 = vadd.f32 %v2590_v26, %v2589_v24 }
 0x162   :  { %v1971_v30 = vadd.f32 %v2588_v22, %v1930_v27  ;;  %v1933_v31 = vadd.f32 %v2569_v28, %v1892_v16 }
 0x164   :  { %v1974_v32 = vadd.f32 %v2591_v29, %v1933_v31 }
 0x17c   :  { %v2608_v33 = vpop.f32.mrb[12].mxu0 }
 0x17d   :  { %v2630_v34 = vpop.f32.mrb[12].mxu1  ;;  %v2609_v35 = vpop.f32.mrb[13].mxu0 }
 0x17e   :  { %v2610_v36 = vadd.f32 %v2609_v35, %v2608_v33  ;;  %v2631_v37 = vpop.f32.mrb[13].mxu1  ;;  %v2611_v38 = vpop.f32.mrb[14].mxu0 }
 0x17f   :  { %v2632_v39 = vadd.f32 %v2631_v37, %v2630_v34  ;;  %v2633_v40 = vpop.f32.mrb[14].mxu1  ;;  %v2612_v41 = vpop.f32.mrb[15].mxu0 }
 0x180   :  { %v2012_v42 = vadd.f32 %v2610_v36, %v1971_v30  ;;  %v2613_v43 = vadd.f32 %v2612_v41, %v2611_v38  ;;  %v2634_v44 = vpop.f32.mrb[15].mxu1 }
 0x181   :  { %v2635_v45 = vadd.f32 %v2634_v44, %v2633_v40 }
 0x182   :  { %v2053_v46 = vadd.f32 %v2632_v39, %v2012_v42  ;;  %v2015_v47 = vadd.f32 %v2613_v43, %v1974_v32 }
 0x184   :  { %v2056_v48 = vadd.f32 %v2635_v45, %v2015_v47 }
 0x19c   :  { %v2652_v49 = vpop.f32.mrb[16].mxu0 }
 0x19d   :  { %v2674_v50 = vpop.f32.mrb[16].mxu1  ;;  %v2653_v51 = vpop.f32.mrb[17].mxu0 }
 0x19e   :  { %v2654_v52 = vadd.f32 %v2653_v51, %v2652_v49  ;;  %v2675_v53 = vpop.f32.mrb[17].mxu1  ;;  %v2655_v54 = vpop.f32.mrb[18].mxu0 }
 0x19f   :  { %v2676_v55 = vadd.f32 %v2675_v53, %v2674_v50  ;;  %v2677_v56 = vpop.f32.mrb[18].mxu1  ;;  %v2656_v57 = vpop.f32.mrb[19].mxu0 }
 0x1a0   :  { %v2094_v58 = vadd.f32 %v2654_v52, %v2053_v46  ;;  %v2657_v59 = vadd.f32 %v2656_v57, %v2655_v54  ;;  %v2678_v60 = vpop.f32.mrb[19].mxu1 }
 0x1a1   :  { %v2679_v61 = vadd.f32 %v2678_v60, %v2677_v56 }
 0x1a2   :  { %v2135_v62 = vadd.f32 %v2676_v55, %v2094_v58  ;;  %v2097_v63 = vadd.f32 %v2657_v59, %v2056_v48 }
 0x1a4   :  { %v2138_v0 = vadd.f32 %v2679_v61, %v2097_v63 }
 0x1bc   :  { %v2696_v1 = vpop.f32.mrb[20].mxu0 }
 0x1bd   :  { %v2718_v2 = vpop.f32.mrb[20].mxu1  ;;  %v2697_v3 = vpop.f32.mrb[21].mxu0 }
 0x1be   :  { %v2719_v4 = vpop.f32.mrb[21].mxu1  ;;  %v2698_v5 = vadd.f32 %v2697_v3, %v2696_v1  ;;  %v2699_v7 = vpop.f32.mrb[22].mxu0 }
 0x1bf   :  { %v2720_v6 = vadd.f32 %v2719_v4, %v2718_v2  ;;  %v2721_v8 = vpop.f32.mrb[22].mxu1  ;;  %v2700_v9 = vpop.f32.mrb[23].mxu0 }
 0x1c0   :  { %v2722_v10 = vpop.f32.mrb[23].mxu1  ;;  %v2176_v11 = vadd.f32 %v2698_v5, %v2135_v62  ;;  %v2701_v12 = vadd.f32 %v2700_v9, %v2699_v7 }
 0x1c1   :  { %v2723_v13 = vadd.f32 %v2722_v10, %v2721_v8 }
 0x1c2   :  { %v2217_v14 = vadd.f32 %v2720_v6, %v2176_v11  ;;  %v2179_v15 = vadd.f32 %v2701_v12, %v2138_v0 }
 0x1c4   :  { %2223 = vst [vmem:[#allocation7] sm:$0xff] %v2217_v14  ;;  %v2220_v16 = vadd.f32 %v2723_v13, %v2179_v15 }
 0x1c6   :  { %2224 = vst [vmem:[#allocation7 + $0x8] sm:$0xff] %v2220_v16 }
 0x1c7   :  { %2980 = shalt.err (!%p2977_p6)
}
 0x1c8   :  { %s2981_s17 = scalar_lea.hbm %s3068_s3, 256 }
 0x1c9   :  { %p2982_p7 = scmp.ne.s32.totalorder %s3068_s3, %s2981_s17  ;;  %p2985_p8 = scmp.lt.u32.totalorder %s2981_s17, %s3068_s3 }
 0x1cb   :  { %p2987_p9 = pnand %p2985_p8, %p2982_p7 }
 0x1cd   :  { %2990 = shalt.err (!%p2987_p9)
}
 0x1ce   :  { %s3004_s22 = smov 128   ;;  %s3005_s23 = smov 8  }
 0x1cf   :  { %2236 = dma.vmem_to_hbm [thread:$0]  %s2231_s13, 256, %s3068_s3, [#allocation4], %s3004_s22, %s3004_s22, %s3005_s23  }
 0x1d0   :  { %2995 = dma.done.wait [#allocation4], 256  }
 0x1d1   :  { %2996 = vsyncadd [#allocation4], 4294967040 }
 0x1d2   :  { %2240 = vsyncpa [#allocation3], 1 }
 0x1d3   :  { %2241 = vsyncpa [#allocation6], 1 }
 0x1d4   :  { %2242 = vsyncpa [#allocation4], 1 }

</bundles_post_ra>
